<compile_context>
chip_gen: v7x
topology: tpu7x:2x2x1
jax: 0.10.0
libtpu: 0.0.40
codegen_flags: <defaults>
</compile_context>

<pallas_src>
import functools

import jax
import jax.numpy as jnp
from jax.experimental import pallas as pl
from jax.experimental.pallas import tpu as pltpu


def _round_up(v, m):
    return ((v + m - 1) // m) * m


# ---------------------------------------------------------------------------
# Fused MLP kernel: all linear layers + ReLU applied inside one kernel body.
# Refs: x, (w0, b0), (w1, b1), ..., (w_{L-1}, b_{L-1}), out
# ---------------------------------------------------------------------------
def _forecast_mlp_kernel(*refs, num_linear):
    x_ref = refs[0]
    out_ref = refs[-1]
    wb = refs[1:-1]                                    # 2 * num_linear refs

    h = x_ref[...]                                     # (TM, in_dim) row tile
    for i in range(num_linear - 1):                    # hidden layers: Linear + ReLU
        w = wb[2 * i][...]
        b = wb[2 * i + 1][...]
        h = jnp.maximum(
            jnp.dot(h, w, preferred_element_type=jnp.float32) + b, 0.0)
        # dropout == identity (eval mode)
    w = wb[-2][...]                                    # final layer: Linear only
    b = wb[-1][...]
    out_ref[...] = jnp.dot(h, w, preferred_element_type=jnp.float32) + b


# ---------------------------------------------------------------------------
# One-time parameter preparation (hoisted out of the per-call forward):
#   * biases reshaped to (1, d) once
#   * ONLY the final layer's output dim is zero-padded to a multiple of 128
#     (the output is the only tensor written back to HBM; hidden activations
#     never leave VMEM so their dims stay unpadded).
# ---------------------------------------------------------------------------
def prepare_params(weights, biases):
    num_linear = len(weights)
    out_dim = weights[-1].shape[1]
    out_pad = _round_up(out_dim, 128)

    w_p, b_p = [], []
    for i, (w, b) in enumerate(zip(weights, biases)):
        w = jnp.asarray(w, jnp.float32)
        b = jnp.asarray(b, jnp.float32).reshape(1, -1)
        if i == num_linear - 1 and out_pad != out_dim:
            w = jnp.zeros((w.shape[0], out_pad), jnp.float32).at[:, :out_dim].set(w)
            b = jnp.zeros((1, out_pad), jnp.float32).at[:, :out_dim].set(b)
        w_p.append(w)
        b_p.append(b)
    return tuple(w_p), tuple(b_p)


# ---------------------------------------------------------------------------
# Fused forward (one pallas_call for the whole MLP)
# ---------------------------------------------------------------------------
def forecasting_model_forward(x, w_p, b_p, *, out_dim, row_block=1024):
    """x: (N, in_dim) f32.  w_p/b_p: output of prepare_params()."""
    num_linear = len(w_p)
    N, in_dim = x.shape
    out_pad = w_p[-1].shape[1]
    x = x.astype(jnp.float32)

    # Row tiling: large fixed tile for HBM-pipelining efficiency, but guarantee
    # >= 2 grid points whenever N > 8 so the "parallel" row axis can shard
    # across both TensorCores on v7x.  The ragged last block (when tm does not
    # divide N) is masked by Pallas — no per-call padding of x, no shrink loop.
    tm = max(8, min(row_block, _round_up(pl.cdiv(N, 2), 8)))
    grid = (pl.cdiv(N, tm),)

    # x is the only blocked (row-tiled, pipelined) input.  Weights/biases are
    # whole-array VMEM-resident operands: one copy, no per-grid-step double
    # buffering, since they are invariant across the row grid.
    # (On v5e, pipeline_mode=pl.Buffered(3) on the x spec could hide more DMA.)
    in_specs = [pl.BlockSpec((tm, in_dim), lambda i: (i, 0))]
    operands = [x]
    for w, b in zip(w_p, b_p):
        in_specs.append(pl.BlockSpec(memory_space=pltpu.MemorySpace.VMEM))
        in_specs.append(pl.BlockSpec(memory_space=pltpu.MemorySpace.VMEM))
        operands.append(w)
        operands.append(b)

    flops = 2 * N * sum(int(w.shape[0]) * int(w.shape[1]) for w in w_p)
    bytes_accessed = 4 * (int(x.size)
                          + sum(int(w.size) for w in w_p)
                          + sum(int(b.size) for b in b_p)
                          + N * out_pad)

    out_p = pl.pallas_call(
        functools.partial(_forecast_mlp_kernel, num_linear=num_linear),
        out_shape=jax.ShapeDtypeStruct((N, out_pad), jnp.float32),
        grid=grid,
        in_specs=in_specs,
        out_specs=pl.BlockSpec((tm, out_pad), lambda i: (i, 0)),
        compiler_params=pltpu.CompilerParams(
            dimension_semantics=("parallel",)),
        cost_estimate=pl.CostEstimate(flops=flops, transcendentals=0,
                                      bytes_accessed=bytes_accessed),
    )(*operands)

    # Slice off the lane padding of the final layer; rows are exact (no pad).
    return out_p[:, :out_dim]


# ---------------------------------------------------------------------------
# Deterministic parameter initialization (synthetic; no checkpoint loading)
# ---------------------------------------------------------------------------
def init_params(key, *, in_dim, hid_dim, out_dim, n_layers):
    # PyTorch module: [Linear(in,hid)] + [Linear(hid,hid)]*(n_layers-1) + [Linear(hid,out)]
    shapes = [(in_dim, hid_dim)]
    shapes += [(hid_dim, hid_dim)] * (n_layers - 1)
    shapes += [(hid_dim, out_dim)]

    keys = jax.random.split(key, 2 * len(shapes))
    weights, biases = [], []
    for i, (di, do) in enumerate(shapes):
        weights.append(0.1 * jax.random.normal(keys[2 * i], (di, do), jnp.float32))
        biases.append(0.1 * jax.random.normal(keys[2 * i + 1], (do,), jnp.float32))
    return weights, biases


def reference_forward(x, weights, biases):
    h = x
    for i in range(len(weights) - 1):
        h = jnp.maximum(h @ weights[i] + biases[i], 0.0)
    return h @ weights[-1] + biases[-1]


if __name__ == "__main__":
    # Small config consistent with MTAD-GAT usage of Forecasting_Model:
    # input = GRU hidden state, in_dim = hid_dim = 32, out_dim = n_features = 4.
    N = 16          # batch rows
    IN_DIM = 32
    HID_DIM = 32
    OUT_DIM = 4
    N_LAYERS = 3    # -> 4 Linear layers total
    # dropout = 0.3 in the reference; identity in eval mode.

    key = jax.random.PRNGKey(0)
    k_param, k_x = jax.random.split(key)
    weights, biases = init_params(k_param, in_dim=IN_DIM, hid_dim=HID_DIM,
                                  out_dim=OUT_DIM, n_layers=N_LAYERS)
    x = jax.random.normal(k_x, (N, IN_DIM), jnp.float32)

    # One-time parameter prep (hoisted out of the jitted per-call forward).
    w_p, b_p = prepare_params(weights, biases)

    fwd = jax.jit(forecasting_model_forward,
                  static_argnames=("out_dim", "row_block"))
    out = fwd(x, w_p, b_p, out_dim=OUT_DIM)
    jax.block_until_ready(out)

    ref = reference_forward(x, weights, biases)
    assert out.shape == (N, OUT_DIM), out.shape
    assert jnp.all(jnp.isfinite(out))
    assert jnp.allclose(out, ref, atol=1e-5, rtol=1e-5), float(jnp.max(jnp.abs(out - ref)))
    print("KERNEL_OK")
</pallas_src>

<mosaic_0001>
module attributes {stable_mosaic.version = 11 : i64} {
  func.func @_forecast_mlp_kernel(%arg0: i32, %arg1: memref<8x32xf32, #tpu.memory_space<vmem>>, %arg2: memref<32x32xf32, #tpu.memory_space<vmem>>, %arg3: memref<1x32xf32, #tpu.memory_space<vmem>>, %arg4: memref<32x32xf32, #tpu.memory_space<vmem>>, %arg5: memref<1x32xf32, #tpu.memory_space<vmem>>, %arg6: memref<32x32xf32, #tpu.memory_space<vmem>>, %arg7: memref<1x32xf32, #tpu.memory_space<vmem>>, %arg8: memref<32x128xf32, #tpu.memory_space<vmem>>, %arg9: memref<1x128xf32, #tpu.memory_space<vmem>>, %arg10: memref<8x128xf32, #tpu.memory_space<vmem>>) attributes {dimension_semantics = [#tpu.dimension_semantics<parallel>], iteration_bounds = array<i64: 2>, scalar_prefetch = 0 : i64, scratch_operands = 0 : i64, tpu.core_type = #tpu.core_type<tc>, window_params = [{transform_indices = @transform_0, window_bounds = array<i64: 8, 32>}, {pipeline_mode = #tpu.pipeline_mode<synchronous>, transform_indices = @transform_1, window_bounds = array<i64: 32, 32>}, {pipeline_mode = #tpu.pipeline_mode<synchronous>, transform_indices = @transform_2, window_bounds = array<i64: 1, 32>}, {pipeline_mode = #tpu.pipeline_mode<synchronous>, transform_indices = @transform_3, window_bounds = array<i64: 32, 32>}, {pipeline_mode = #tpu.pipeline_mode<synchronous>, transform_indices = @transform_4, window_bounds = array<i64: 1, 32>}, {pipeline_mode = #tpu.pipeline_mode<synchronous>, transform_indices = @transform_5, window_bounds = array<i64: 32, 32>}, {pipeline_mode = #tpu.pipeline_mode<synchronous>, transform_indices = @transform_6, window_bounds = array<i64: 1, 32>}, {pipeline_mode = #tpu.pipeline_mode<synchronous>, transform_indices = @transform_7, window_bounds = array<i64: 32, 128>}, {pipeline_mode = #tpu.pipeline_mode<synchronous>, transform_indices = @transform_8, window_bounds = array<i64: 1, 128>}, {transform_indices = @transform_9, window_bounds = array<i64: 8, 128>}]} {
    %c0 = arith.constant 0 : index
    %c0_0 = arith.constant 0 : index
    %0 = vector.load %arg1[%c0, %c0_0] : memref<8x32xf32, #tpu.memory_space<vmem>>, vector<8x32xf32>
    %c0_1 = arith.constant 0 : index
    %c0_2 = arith.constant 0 : index
    %1 = vector.load %arg2[%c0_1, %c0_2] : memref<32x32xf32, #tpu.memory_space<vmem>>, vector<32x32xf32>
    %c0_3 = arith.constant 0 : index
    %c0_4 = arith.constant 0 : index
    %2 = vector.load %arg3[%c0_3, %c0_4] : memref<1x32xf32, #tpu.memory_space<vmem>>, vector<1x32xf32>
    %cst = arith.constant dense<0.000000e+00> : vector<8x32xf32>
    %3 = tpu.matmul %0, %1, %cst {dimension_numbers = #tpu.dot_dimension_numbers<[1], [0], [0], [1], [0, 0, 1, 1], [], []>} : vector<8x32xf32>, vector<32x32xf32>, vector<8x32xf32> -> vector<8x32xf32>
    %4 = vector.broadcast %2 : vector<1x32xf32> to vector<8x32xf32>
    %5 = arith.addf %3, %4 : vector<8x32xf32>
    %cst_5 = arith.constant 0.000000e+00 : f32
    %6 = vector.broadcast %cst_5 : f32 to vector<8x32xf32>
    %7 = arith.maximumf %5, %6 : vector<8x32xf32>
    %c0_6 = arith.constant 0 : index
    %c0_7 = arith.constant 0 : index
    %8 = vector.load %arg4[%c0_6, %c0_7] : memref<32x32xf32, #tpu.memory_space<vmem>>, vector<32x32xf32>
    %c0_8 = arith.constant 0 : index
    %c0_9 = arith.constant 0 : index
    %9 = vector.load %arg5[%c0_8, %c0_9] : memref<1x32xf32, #tpu.memory_space<vmem>>, vector<1x32xf32>
    %cst_10 = arith.constant dense<0.000000e+00> : vector<8x32xf32>
    %10 = tpu.matmul %7, %8, %cst_10 {dimension_numbers = #tpu.dot_dimension_numbers<[1], [0], [0], [1], [0, 0, 1, 1], [], []>} : vector<8x32xf32>, vector<32x32xf32>, vector<8x32xf32> -> vector<8x32xf32>
    %11 = vector.broadcast %9 : vector<1x32xf32> to vector<8x32xf32>
    %12 = arith.addf %10, %11 : vector<8x32xf32>
    %cst_11 = arith.constant 0.000000e+00 : f32
    %13 = vector.broadcast %cst_11 : f32 to vector<8x32xf32>
    %14 = arith.maximumf %12, %13 : vector<8x32xf32>
    %c0_12 = arith.constant 0 : index
    %c0_13 = arith.constant 0 : index
    %15 = vector.load %arg6[%c0_12, %c0_13] : memref<32x32xf32, #tpu.memory_space<vmem>>, vector<32x32xf32>
    %c0_14 = arith.constant 0 : index
    %c0_15 = arith.constant 0 : index
    %16 = vector.load %arg7[%c0_14, %c0_15] : memref<1x32xf32, #tpu.memory_space<vmem>>, vector<1x32xf32>
    %cst_16 = arith.constant dense<0.000000e+00> : vector<8x32xf32>
    %17 = tpu.matmul %14, %15, %cst_16 {dimension_numbers = #tpu.dot_dimension_numbers<[1], [0], [0], [1], [0, 0, 1, 1], [], []>} : vector<8x32xf32>, vector<32x32xf32>, vector<8x32xf32> -> vector<8x32xf32>
    %18 = vector.broadcast %16 : vector<1x32xf32> to vector<8x32xf32>
    %19 = arith.addf %17, %18 : vector<8x32xf32>
    %cst_17 = arith.constant 0.000000e+00 : f32
    %20 = vector.broadcast %cst_17 : f32 to vector<8x32xf32>
    %21 = arith.maximumf %19, %20 : vector<8x32xf32>
    %c0_18 = arith.constant 0 : index
    %c0_19 = arith.constant 0 : index
    %22 = vector.load %arg8[%c0_18, %c0_19] : memref<32x128xf32, #tpu.memory_space<vmem>>, vector<32x128xf32>
    %c0_20 = arith.constant 0 : index
    %c0_21 = arith.constant 0 : index
    %23 = vector.load %arg9[%c0_20, %c0_21] : memref<1x128xf32, #tpu.memory_space<vmem>>, vector<1x128xf32>
    %cst_22 = arith.constant dense<0.000000e+00> : vector<8x128xf32>
    %24 = tpu.matmul %21, %22, %cst_22 {dimension_numbers = #tpu.dot_dimension_numbers<[1], [0], [0], [1], [0, 0, 1, 1], [], []>} : vector<8x32xf32>, vector<32x128xf32>, vector<8x128xf32> -> vector<8x128xf32>
    %25 = vector.broadcast %23 : vector<1x128xf32> to vector<8x128xf32>
    %26 = arith.addf %24, %25 : vector<8x128xf32>
    %c0_23 = arith.constant 0 : index
    %c0_24 = arith.constant 0 : index
    %27 = vector.load %arg10[%c0_23, %c0_24] : memref<8x128xf32, #tpu.memory_space<vmem>>, vector<8x128xf32>
    tpu.vector_store %arg10[%c0_23, %c0_24], %26 {strides = array<i32>} : memref<8x128xf32, #tpu.memory_space<vmem>>, vector<8x128xf32>,
    return
  }
  func.func @transform_0(%arg0: i32) -> (i32, i32) {
    %c0_i32 = arith.constant 0 : i32
    %c0_i32_0 = arith.constant 0 : i32
    return %arg0, %c0_i32 : i32, i32
  }
  func.func @transform_1(%arg0: i32) -> (i32, i32) {
    %c0_i32 = arith.constant 0 : i32
    %c0_i32_0 = arith.constant 0 : i32
    %c0_i32_1 = arith.constant 0 : i32
    return %c0_i32, %c0_i32_0 : i32, i32
  }
  func.func @transform_2(%arg0: i32) -> (i32, i32) {
    %c0_i32 = arith.constant 0 : i32
    %c0_i32_0 = arith.constant 0 : i32
    %c0_i32_1 = arith.constant 0 : i32
    return %c0_i32, %c0_i32_0 : i32, i32
  }
  func.func @transform_3(%arg0: i32) -> (i32, i32) {
    %c0_i32 = arith.constant 0 : i32
    %c0_i32_0 = arith.constant 0 : i32
    %c0_i32_1 = arith.constant 0 : i32
    return %c0_i32, %c0_i32_0 : i32, i32
  }
  func.func @transform_4(%arg0: i32) -> (i32, i32) {
    %c0_i32 = arith.constant 0 : i32
    %c0_i32_0 = arith.constant 0 : i32
    %c0_i32_1 = arith.constant 0 : i32
    return %c0_i32, %c0_i32_0 : i32, i32
  }
  func.func @transform_5(%arg0: i32) -> (i32, i32) {
    %c0_i32 = arith.constant 0 : i32
    %c0_i32_0 = arith.constant 0 : i32
    %c0_i32_1 = arith.constant 0 : i32
    return %c0_i32, %c0_i32_0 : i32, i32
  }
  func.func @transform_6(%arg0: i32) -> (i32, i32) {
    %c0_i32 = arith.constant 0 : i32
    %c0_i32_0 = arith.constant 0 : i32
    %c0_i32_1 = arith.constant 0 : i32
    return %c0_i32, %c0_i32_0 : i32, i32
  }
  func.func @transform_7(%arg0: i32) -> (i32, i32) {
    %c0_i32 = arith.constant 0 : i32
    %c0_i32_0 = arith.constant 0 : i32
    %c0_i32_1 = arith.constant 0 : i32
    return %c0_i32, %c0_i32_0 : i32, i32
  }
  func.func @transform_8(%arg0: i32) -> (i32, i32) {
    %c0_i32 = arith.constant 0 : i32
    %c0_i32_0 = arith.constant 0 : i32
    %c0_i32_1 = arith.constant 0 : i32
    return %c0_i32, %c0_i32_0 : i32, i32
  }
  func.func @transform_9(%arg0: i32) -> (i32, i32) {
    %c0_i32 = arith.constant 0 : i32
    %c0_i32_0 = arith.constant 0 : i32
    return %arg0, %c0_i32 : i32, i32
  }
}

</mosaic_0001>

<bundles_post_ra>
// kernel: forecasting_model_forward.1
= control target key start
LH: loop header
LB: loop body
LE: loop exit
PB: predicated region body
PF: predicated region fallthrough
CT: control target
= control target key end

     0   :  { %s1560_s0 = inlined_call_operand.hbm [shape: f32[16,32], index: 0, kind: input, shape index: {}]   ;;  %s1561_s1 = inlined_call_operand.hbm [shape: f32[32,32], index: 1, kind: input, shape index: {}]   ;;  %s1562_s2 = inlined_call_operand.vmem [shape: f32[1,32], index: 2, kind: input, shape index: {}]   ;;  %s1563_s3 = inlined_call_operand.hbm [shape: f32[32,32], index: 3, kind: input, shape index: {}]   ;;  %s1564_s4 = inlined_call_operand.vmem [shape: f32[1,32], index: 4, kind: input, shape index: {}]   ;;  %s1565_s5 = inlined_call_operand.hbm [shape: f32[32,32], index: 5, kind: input, shape index: {}]   ;;  %s1566_s6 = inlined_call_operand.vmem [shape: f32[1,32], index: 6, kind: input, shape index: {}]   ;;  %s1567_s7 = inlined_call_operand.hbm [shape: f32[32,128], index: 7, kind: input, shape index: {}]   ;;  %s1568_s8 = inlined_call_operand.vmem [shape: f32[1,128], index: 8, kind: input, shape index: {}]   ;;  %s1569_s9 = inlined_call_operand.vmem [shape: f32[16,128], index: 9, kind: output, shape index: {}]  }
   0x1   :  { %1572 = sst [smem:[#allocation13_spill]] %s1569_s9 }
   0x2   :  { %14 = vsyncpa [#allocation3], 0 }
   0x3   :  { %16 = vsyncpa [#allocation3 + $0x1], 0 }
   0x4   :  { %17 = vsyncpa [#allocation5], 0 }
   0x5   :  { %18 = vsyncpa [#allocation8], 0  ;;  %s1296_s30 = smov 0   ;;  %s1298_s10 = smov 0  }
   0x6   :  { %s1300_s11 = smov 0   ;;  %s1302_s12 = smov 0  }
   0x7 LB: > { %s1236_s13 = smov [#allocation4]   ;;  %s1317_s15 = sadd.s32 4294967295, %s1234_s12   ;;  %s1234_s12 = sphi %s1302_s12, %s1588_s12   ;;  %s1230_s11 = sphi %s1300_s11, %s1587_s11   ;;  %s1226_s10 = sphi %s1298_s10, %s1586_s10   ;;  %s1222_s30 = sphi %s1296_s30, %s1585_s30  }
   0x8   : > { %s261_s14 = sshll.u32 %s1236_s13, 4  ;;  %p852_p0 = scmp.ge.s32.totalorder %s1234_s12, 1  ;;  %s1322_s14 = int_to_ptr.vmem [resolvable:$true] %s261_s14 }
   0x9   : > { %p1570_p1 = scmp.eq.s32.totalorder %s1317_s15, 0  ;;  %p249_p2 = scmp.lt.s32.totalorder %s1234_s12, 3 }
   0xa   : > { %s1237_s17 = smov [#allocation7]   ;;  %s1238_s20 = smov [#allocation6]  }
   0xb   : > { %p1324_p3 = pnand %p852_p0, %p249_p2  ;;  %s293_s18 = sshll.u32 %s1237_s17, 4  ;;  %s1336_s18 = int_to_ptr.vmem [resolvable:$true] %s293_s18 }
   0xc   : > { %s277_s21 = sshll.u32 %s1238_s20, 4  ;;  %s1050_s24 = scalar_lea.hbm %s1561_s1, 512  ;;  %s1338_s21 = int_to_ptr.vmem [resolvable:$true] %s277_s21 }
   0xd   : > { %s1573_s16 = scalar_select %p1324_p3, 1, 0 }
   0xe   : > { %p983_p4 = pneg %p1324_p3  ;;  %p1051_p6 = scmp.ne.s32.totalorder %s1561_s1, %s1050_s24 }
   0xf   : > { %p1057_p10 = scmp.lt.u32.totalorder %s1050_s24, %s1561_s1 }
  0x10   : > { %p1332_p5 = pnand %p983_p4, %p1570_p1 }
  0x12   : > { %p1348_p7 = pneg %p1332_p5 }
  0x14   : > { %p1053_p8 = pnand %p1348_p7, %p1051_p6 }
  0x16   : > { %p1054_p9 = pneg %p1053_p8 }
  0x18   : > { %p1059_p11 = pnand %p1057_p10, %p1054_p9 }
  0x1a   : > { %1062 = shalt.err (!%p1059_p11)
}
  0x1b   : > { %s1063_s13 = scalar_lea.vmem %s1322_s14, 512  ;;  %p1071_p2 = scmp.lt.s32.totalorder %s1322_s14, %s1322_s14 }
  0x1c   : > { %p1064_p12 = scmp.ne.s32.totalorder %s1322_s14, %s1063_s13  ;;  %p1072_p4 = scmp.lt.s32.totalorder %s1063_s13, %s1063_s13 }
  0x1e   : > { %p1066_p13 = pnand %p1064_p12, %p1348_p7  ;;  %p1073_p6 = por %p1072_p4, %p1071_p2 }
  0x20   : > { %p1067_p0 = pneg %p1066_p13 }
  0x22   : > { %p1074_p8 = pnand %p1073_p6, %p1067_p0 }
  0x24   : > { %1077 = shalt.err (!%p1074_p8)
}
  0x25   : > { %s1239_s17 = smov 128   ;;  %s1240_s20 = smov 8  }
  0x26   : > { %986 = dma.hbm_to_vmem [thread:$0]  (!%p1332_p5), %s1561_s1, 512, %s1322_s14, [#allocation5], %s1239_s17, %s1239_s17, %s1240_s20  }
  0x27   : > { %s1078_s26 = scalar_lea.hbm %s1565_s5, 512 }
  0x28   : > { %p1079_p9 = scmp.ne.s32.totalorder %s1565_s5, %s1078_s26  ;;  %p1085_p12 = scmp.lt.u32.totalorder %s1078_s26, %s1565_s5 }
  0x2a   : > { %p1081_p10 = pnand %p1079_p9, %p1348_p7 }
  0x2c   : > { %p1082_p11 = pneg %p1081_p10 }
  0x2e   : > { %p1087_p13 = pnand %p1085_p12, %p1082_p11 }
  0x30   : > { %1090 = shalt.err (!%p1087_p13)
}
  0x31   : > { %s1091_s14 = scalar_lea.vmem %s1336_s18, 512  ;;  %p1099_p6 = scmp.lt.s32.totalorder %s1336_s18, %s1336_s18 }
  0x32   : > { %p1092_p0 = scmp.ne.s32.totalorder %s1336_s18, %s1091_s14  ;;  %p1100_p8 = scmp.lt.s32.totalorder %s1091_s14, %s1091_s14 }
  0x34   : > { %p1094_p2 = pnand %p1092_p0, %p1348_p7  ;;  %p1101_p9 = por %p1100_p8, %p1099_p6 }
  0x36   : > { %p1095_p4 = pneg %p1094_p2 }
  0x38   : > { %p1102_p10 = pnand %p1101_p9, %p1095_p4 }
  0x3a   : > { %1105 = shalt.err (!%p1102_p10)
}
  0x3b   : > { %992 = dma.hbm_to_vmem [thread:$0]  (!%p1332_p5), %s1565_s5, 512, %s1336_s18, [#allocation8], %s1239_s17, %s1239_s17, %s1240_s20  }
  0x3c   : > { %s1106_s25 = scalar_lea.hbm %s1563_s3, 512 }
  0x3d   : > { %p1107_p11 = scmp.ne.s32.totalorder %s1563_s3, %s1106_s25  ;;  %p1113_p0 = scmp.lt.u32.totalorder %s1106_s25, %s1563_s3 }
  0x3f   : > { %p1109_p12 = pnand %p1107_p11, %p1348_p7 }
  0x41   : > { %p1110_p13 = pneg %p1109_p12 }
  0x43   : > { %p1115_p2 = pnand %p1113_p0, %p1110_p13 }
  0x45   : > { %1118 = shalt.err (!%p1115_p2)
}
  0x46   : > { %s1119_s18 = scalar_lea.vmem %s1338_s21, 512  ;;  %p1127_p9 = scmp.lt.s32.totalorder %s1338_s21, %s1338_s21 }
  0x47   : > { %p1120_p4 = scmp.ne.s32.totalorder %s1338_s21, %s1119_s18  ;;  %p1128_p10 = scmp.lt.s32.totalorder %s1119_s18, %s1119_s18 }
  0x49   : > { %p1122_p6 = pnand %p1120_p4, %p1348_p7  ;;  %p1129_p11 = por %p1128_p10, %p1127_p9 }
  0x4b   : > { %p1123_p8 = pneg %p1122_p6 }
  0x4d   : > { %p1130_p12 = pnand %p1129_p11, %p1123_p8 }
  0x4f   : > { %1133 = shalt.err (!%p1130_p12)
}
  0x50   : > { %989 = dma.hbm_to_vmem [thread:$0]  (!%p1332_p5), %s1563_s3, 512, %s1338_s21, [#allocation5], %s1239_s17, %s1239_s17, %s1240_s20  }
  0x51   : > { %s1241_s22 = smov [#allocation9]   ;;  %s1134_s26 = scalar_lea.hbm %s1567_s7, 512 }
  0x52   : > { %s309_s23 = sshll.u32 %s1241_s22, 4  ;;  %p1135_p13 = scmp.ne.s32.totalorder %s1567_s7, %s1134_s26  ;;  %s310_s23 = int_to_ptr.vmem [resolvable:$true] %s309_s23 }
  0x53   : > { %p1141_p4 = scmp.lt.u32.totalorder %s1134_s26, %s1567_s7 }
  0x54   : > { %p1137_p0 = pnand %p1135_p13, %p1348_p7 }
  0x56   : > { %p1138_p2 = pneg %p1137_p0 }
  0x58   : > { %p1143_p6 = pnand %p1141_p4, %p1138_p2 }
  0x5a   : > { %1146 = shalt.err (!%p1143_p6)
}
  0x5b   : > { %s1147_s21 = scalar_lea.vmem %s310_s23, 512  ;;  %p1155_p11 = scmp.lt.s32.totalorder %s310_s23, %s310_s23 }
  0x5c   : > { %p1148_p8 = scmp.ne.s32.totalorder %s310_s23, %s1147_s21  ;;  %p1156_p12 = scmp.lt.s32.totalorder %s1147_s21, %s1147_s21 }
  0x5e   : > { %p1150_p9 = pnand %p1148_p8, %p1348_p7  ;;  %p1157_p1 = por %p1156_p12, %p1155_p11 }
  0x60   : > { %p1151_p10 = pneg %p1150_p9 }
  0x62   : > { %p1158_p3 = pnand %p1157_p1, %p1151_p10 }
  0x64   : > { %1161 = shalt.err (!%p1158_p3)
}
  0x65   : > { %995 = dma.hbm_to_vmem [thread:$0]  (!%p1332_p5), %s1567_s7, 512, %s310_s23, [#allocation8], %s1239_s17, %s1239_s17, %s1240_s20  }
  0x66   : > { %s1446_s19 = sadd.s32 1, %s1234_s12   ;;  %s31_s27 = sadd.s32 1, %s1230_s11 }
  0x67   : > { %s28_s22 = ssub.s32 %s1234_s12, %s1446_s19  ;;  %p38_p1 = scmp.ne.s32.totalorder %s1230_s11, %s1226_s10 }
  0x68   : > { %p29_p3 = scmp.eq.s32.totalorder %s28_s22, 0  ;;  %p39_p7 = scmp.eq.s32.totalorder %s1234_s12, 0 }
  0x69   : > { %p44_p13 = scmp.ne.s32.totalorder %s1226_s10, %s1222_s30  ;;  %p1004_p0 = scmp.lt.s32.totalorder %s1234_s12, 2 }
  0x6a   : > { %s1458_s24 = scalar_select %p29_p3, %s1230_s11, %s31_s27  }
  0x6b   : > { %p40_p2 = por %p39_p7, %p38_p1  ;;  %p1576_p4 = scmp.eq.s32.totalorder %s1317_s15, 0 }
  0x6c   : > { %s326_s26 = sand.u32 1, %s1230_s11   ;;  %s859_s17 = sshll.u32 %s1234_s12, 7 }
  0x6d   : > { %p1462_p6 = por %p1576_p4, %p44_p13  ;;  %s858_s20 = sshll.u32 %s326_s26, 3 }
  0x6e   : > { %s1471_s29 = scalar_lea.hbm %s1560_s0, %s859_s17  ;;  %s330_s30 = scalar_lea.vmem [#allocation2], %s858_s20 }
  0x6f   : > { %s337_s13 = sshll.u32 %s330_s30, 4  ;;  %p1473_p5 = pnand %p1004_p0, %p40_p2  ;;  %s1477_s13 = int_to_ptr.vmem [resolvable:$true] %s337_s13 }
  0x70   : > { %s327_s12 = scalar_lea.sflag [#allocation3], %s326_s26  ;;  %s1162_s21 = scalar_lea.hbm %s1471_s29, 128 }
  0x71   : > { %p1163_p8 = scmp.ne.s32.totalorder %s1471_s29, %s1162_s21  ;;  %p1164_p9 = pneg %p1473_p5 }
  0x72   : > { %s1167_s27 = scalar_lea.hbm %s1560_s0, 256  ;;  %p1168_p12 = scmp.lt.u32.totalorder %s1471_s29, %s1560_s0 }
  0x73   : > { %p1165_p10 = pnand %p1164_p9, %p1163_p8  ;;  %p1169_p1 = scmp.lt.u32.totalorder %s1167_s27, %s1162_s21 }
  0x74   : > { %p1171_p7 = scmp.lt.u32.totalorder %s1162_s21, %s1471_s29 }
  0x75   : > { %p1166_p11 = pneg %p1165_p10  ;;  %p1170_p3 = por %p1169_p1, %p1168_p12 }
  0x77   : > { %p1172_p13 = por %p1171_p7, %p1170_p3 }
  0x79   : > { %p1173_p0 = pnand %p1172_p13, %p1166_p11 }
  0x7b   : > { %1176 = shalt.err (!%p1173_p0)
}
  0x7c   : > { %s1177_s26 = scalar_lea.vmem %s1477_s13, 128  ;;  %s1242_s20 = smov [#allocation2]  }
  0x7d   : > { %p1178_p2 = scmp.ne.s32.totalorder %s1477_s13, %s1177_s26  ;;  %s1182_s23 = sshll.u32 %s1242_s20, 4  ;;  %s1183_s23 = int_to_ptr.vmem [resolvable:$false] %s1182_s23 }
  0x7e   : > { %s1184_s28 = scalar_lea.vmem %s1183_s23, 256  ;;  %p1185_p10 = scmp.lt.s32.totalorder %s1477_s13, %s1183_s23 }
  0x7f   : > { %p1180_p4 = pnand %p1178_p2, %p1164_p9  ;;  %p1186_p12 = scmp.lt.s32.totalorder %s1184_s28, %s1177_s26 }
  0x81   : > { %p1181_p8 = pneg %p1180_p4  ;;  %p1187_p1 = por %p1186_p12, %p1185_p10 }
  0x83   : > { %p1188_p3 = pnand %p1187_p1, %p1181_p8 }
  0x85   : > { %1191 = shalt.err (!%p1188_p3)
}
  0x86   : > { %999 = dma.hbm_to_vmem [thread:$0]  (!%p1473_p5), %s1471_s29, 128, %s1477_s13, %s327_s12  }
  0x87   : > { %p1579_p11 = scmp.ne.s32.totalorder %s1573_s16, 0 }
  0x88   : > { %s348_s30 = sand.u32 (!%p1579_p11), 1, %s1226_s10  }
  0x89   : > { %346 = sbr.rel (%p1579_p11) target bundleno = 1026 (0x402), region = 56  ;;  %s1507_s21 = sshll.u32 (!%p1579_p11), %s348_s30, 3 }
  0x8a   : > { %s349_s14 = scalar_lea.sflag (!%p1579_p11), [#allocation3], %s348_s30  ;;  %s352_s9 = scalar_lea.vmem (!%p1579_p11), [#allocation2], %s1507_s21 }
  0x90   : > { %1209 = dma.done.wait (%p1462_p6), %s349_s14, 128  }
  0x91   : > { %1211 = vsyncadd (%p1462_p6), %s349_s14, 4294967168  ;;  %p1580_p9 = scmp.eq.s32.totalorder %s1317_s15, 0 }
  0x93   : > { %1213 = dma.done.wait (%p1580_p9), [#allocation5], 1024   ;;  %p1581_p5 = pmov %p1580_p9 }
  0x95   : > { %1215 = vsyncadd (%p1581_p5), [#allocation5], 4294966272  ;;  %p1582_p7 = pmov %p1581_p5 }
  0x96   : > { %p1583_p13 = pmov %p1581_p5 }
  0x97   : > { %1217 = dma.done.wait (%p1582_p7), [#allocation8], 1024  }
  0x98   : > { %1219 = vsyncadd (%p1583_p13), [#allocation8], 4294966272  ;;  %v1243_v0 = vmov 0.0|0.0   ;;  %vm1244_vm0 = vmmov 0   ;;  %v1245_v1 = vmov 0.0   ;;  %v407_v2 = vld [vmem:[#allocation4] sm:$0xff] }
  0x99   : > { %941 = vmatprep.subr.bf16.mxu0 %v1243_v0  ;;  %905 = vmatprep.mubr.msk.f32.mxu0 %vm1244_vm0, %v1245_v1  ;;  %v408_v3 = vld [vmem:[#allocation4 + $0x8] sm:$0xff]  ;;  %v409_v4 = vld [vmem:[#allocation4 + $0x10] sm:$0xff]  ;;  %v410_v6 = vld [vmem:[#allocation4 + $0x18] sm:$0xff]  ;;  %vm418_vm1 = vcmask 261120   ;;  %p402_p6 = scmp.lt.s32.totalorder %s1317_s15, 1  ;;  %s1584_s23 = sld [smem:[#allocation13_spill]] }
  0x9a   : > { %947 = vmatprep.subr.bf16.mxu1 %v1243_v0  ;;  %916 = vmatprep.mubr.msk.f32.mxu1 %vm1244_vm0, %v1245_v1  ;;  %v942_v5 = vpack.c.bf16 %v408_v3, %v407_v2  ;;  %v493_v7 = vld [vmem:[#allocation6] sm:$0xff]  ;;  %v494_v8 = vld [vmem:[#allocation6 + $0x8] sm:$0xff]  ;;  %v945_v9 = vpack.c.bf16 %v410_v6, %v409_v4  ;;  %v406_v11 = vld [vmem:[%s352_s9] sm:$0xff] }
  0x9b   : > { %v948_v10 = vpack.c.bf16 %v494_v8, %v493_v7  ;;  %v495_v12 = vld [vmem:[#allocation6 + $0x10] sm:$0xff]  ;;  %v496_v13 = vld [vmem:[#allocation6 + $0x18] sm:$0xff]  ;;  %v578_v15 = vld [vmem:[#allocation7] sm:$0xff]  ;;  %s1590_s15 = smov (!%p402_p6, %s1317_s15), 1 }
  0x9c   : > { %943 = vmatpush3.bf16.msra.mxu0 %v942_v5  ;;  %v951_v14 = vpack.c.bf16 %v496_v13, %v495_v12  ;;  %v579_v16 = vld [vmem:[#allocation7 + $0x8] sm:$0xff]  ;;  %v867_v18 = vld [vmem:[%s1562_s2] ss:$0 sm:$0xff]  ;;  %v581_v24 = vld [vmem:[#allocation7 + $0x18] sm:$0xff]  ;;  %s866_s27 = sshll.u32 %s1590_s15, 3 }
  0x9d   : > { %944 = vmatprep.subr.bf16.mxu0 %v1243_v0  ;;  %949 = vmatpush3.bf16.msra.mxu1 %v948_v10  ;;  %v954_v17 = vpack.c.bf16 %v579_v16, %v578_v15  ;;  %v580_v23 = vld [vmem:[#allocation7 + $0x10] sm:$0xff]  ;;  %v663_v26 = vld [vmem:[#allocation9] sm:$0xff]  ;;  %v664_v27 = vld [vmem:[#allocation9 + $0x8] sm:$0xff] }
  0x9e   : > { %950 = vmatprep.subr.bf16.mxu1 %v1243_v0  ;;  %v957_v25 = vpack.c.bf16 %v581_v24, %v580_v23  ;;  %v960_v28 = vpack.c.bf16 %v664_v27, %v663_v26  ;;  %v869_v29 = vld [vmem:[%s1564_s4] ss:$0 sm:$0xff]  ;;  %v666_v35 = vld [vmem:[#allocation9 + $0x18] sm:$0xff] }
  0x9f   : > { %v665_v34 = vld [vmem:[#allocation9 + $0x10] sm:$0xff]  ;;  %s405_s28 = scalar_lea.vmem %s1584_s23, %s866_s27 }
  0xa0   : > { %946 = vmatpush3.bf16.msra.mxu0 %v945_v9  ;;  %v963_v36 = vpack.c.bf16 %v666_v35, %v665_v34  ;;  %v871_v37 = vld [vmem:[%s1566_s6] ss:$0 sm:$0xff] }
  0xa1   : > { %953 = vmatprep.subr.bf16.mxu0 %v1243_v0  ;;  %952 = vmatpush3.bf16.msra.mxu1 %v951_v14  ;;  %v873_v42 = vld [vmem:[%s1568_s8] ss:$0 sm:$0xff] }
  0xa2   : > { %959 = vmatprep.subr.bf16.mxu1 %v1243_v0 }
  0xa3   : > { %906 = vmatmul.mubr.msk.f32.vlgmr.msra.gmra.mrb[0].mxu0 %vm418_vm1, %v406_v11 }
  0xa4   : > { %927 = vmatprep.mubr.msk.f32.mxu0 %vm1244_vm0, %v1245_v1  ;;  %955 = vmatpush3.bf16.msra.mxu0 %v954_v17 }
  0xa5   : > { %956 = vmatprep.subr.bf16.mxu0 %v1243_v0 }
  0xa8   : > { %958 = vmatpush3.bf16.msra.mxu0 %v957_v25 }
 0x176   : > { %v488_v19 = vpop.f32.mrb[0].mxu0 }
 0x177   : > { %v489_v20 = vadd.f32 %v867_v18, %v488_v19  ;;  %v907_v21 = vpop.f32.mrb[1].mxu0 }
 0x179   : > { %v492_v22 = vmax.f32 %v489_v20, 0.0 }
 0x17b   : > { %917 = vmatmul.mubr.msk.f32.vlgmr.msra.gmra.mrb[0].mxu1 %vm418_vm1, %v492_v22 }
 0x17c   : > { %938 = vmatprep.mubr.msk.f32.mxu1 %vm1244_vm0, %v1245_v1  ;;  %961 = vmatpush3.bf16.msra.mxu1 %v960_v28 }
 0x17d   : > { %962 = vmatprep.subr.bf16.mxu1 %v1243_v0 }
 0x180   : > { %964 = vmatpush3.bf16.msra.mxu1 %v963_v36 }
 0x24e   : > { %v573_v30 = vpop.f32.mrb[0].mxu1 }
 0x24f   : > { %v574_v31 = vadd.f32 %v869_v29, %v573_v30  ;;  %v918_v32 = vpop.f32.mrb[1].mxu1 }
 0x251   : > { %v577_v33 = vmax.f32 %v574_v31, 0.0 }
 0x253   : > { %928 = vmatmul.mubr.msk.f32.vlgmr.msra.gmra.mrb[2].mxu0 %vm418_vm1, %v577_v33 }
 0x326   : > { %v658_v38 = vpop.f32.mrb[2].mxu0 }
 0x327   : > { %v659_v39 = vadd.f32 %v871_v37, %v658_v38  ;;  %v929_v40 = vpop.f32.mrb[3].mxu0 }
 0x329   : > { %v662_v41 = vmax.f32 %v659_v39, 0.0 }
 0x32b   : > { %939 = vmatmul.mubr.msk.f32.vlgmr.msra.gmra.mrb[2].mxu1 %vm418_vm1, %v662_v41 }
 0x3fe   : > { %v743_v43 = vpop.f32.mrb[2].mxu1 }
 0x3ff   : > { %v744_v44 = vadd.f32 %v873_v42, %v743_v43  ;;  %v940_v45 = vpop.f32.mrb[3].mxu1 }
 0x401   : > { %747 = vst [vmem:[%s405_s28] sm:$0xff] %v744_v44 }
 0x402 PF: > { %p21_p0 = scmp.ge.s32.totalorder %s1446_s19, 4   ;;  %s1585_s30 = smov %s1226_s10 }
 0x403   : > { %s1586_s10 = smov %s1230_s11  ;;  %s1587_s11 = smov %s1458_s24 }
 0x404   : > { %s1588_s12 = smov %s1446_s19  ;;  %23 = sbr.rel (!%p21_p0) target bundleno = 7 (0x7), region = 112 }
 0x40b   :  { %767 = vsyncpa [#allocation3], 1 }
 0x40c   :  { %769 = vsyncpa [#allocation3 + $0x1], 1 }
 0x40d   :  { %770 = vsyncpa [#allocation5], 1 }
 0x40e   :  { %771 = vsyncpa [#allocation8], 1 }

</bundles_post_ra>
